<compile_context>
chip_gen: v5e
topology: v5e:2x2
jax: 0.10.0
libtpu: 0.0.40
codegen_flags: <defaults>
</compile_context>

<pallas_src>
import functools
import math

import jax
import jax.numpy as jnp
from jax.experimental import pallas as pl
from jax.experimental.pallas import tpu as pltpu

LANE = 128  # vreg lane width


def _cdiv(a, b):
    return -(-a // b)


def _round_up(n, m):
    return ((n + m - 1) // m) * m


def policy_net_kernel(state_dim, x_ref, w_ref, b_ref, out_ref):
    """Fused 3-layer MLP + softmax for one batch tile.

    x_ref:   (TB, state_dim)  f32   raw batch tile (no lane padding in HBM)
    w_ref:   (3, 128, 128)    bf16  packed zero-padded weights, (in, out) layout
    b_ref:   (3, 128)         f32   packed biases (padded logit lanes = -1e30)
    out_ref: (TB, 128)        bf16  softmax probabilities (padded lanes ~ 0)
    """
    x = x_ref[...].astype(jnp.bfloat16)            # bf16 for the MXU

    # fc0 + relu: contract only the real `state_dim` rows of the padded weight
    # (padded rows are zero, so this is numerically identical).
    w0 = w_ref[0][:state_dim, :]
    h = jnp.dot(x, w0, preferred_element_type=jnp.float32) + b_ref[0:1, :]
    h = jnp.maximum(h, 0.0)

    # fc1 + relu
    h = jnp.dot(h.astype(jnp.bfloat16), w_ref[1],
                preferred_element_type=jnp.float32) + b_ref[1:2, :]
    h = jnp.maximum(h, 0.0)

    # fc2 logits; padded action lanes get a -1e30 bias -> exp() underflows to 0
    logits = jnp.dot(h.astype(jnp.bfloat16), w_ref[2],
                     preferred_element_type=jnp.float32) + b_ref[2:3, :]

    # numerically-stable softmax over the lane (action) axis, exact normalization
    m = jnp.max(logits, axis=1, keepdims=True)
    e = jnp.exp(logits - m)
    denom = jnp.sum(e, axis=1, keepdims=True)
    out_ref[...] = (e / denom).astype(out_ref.dtype)


def init_params(key, state_dim, action_cnt):
    """torch.nn.Linear default init (uniform +/- 1/sqrt(fan_in)); weights stored
    transposed as (in_features, out_features) so y = x @ W + b."""
    dims = [(state_dim, 64), (64, 32), (32, action_cnt)]
    params = {}
    keys = jax.random.split(key, 2 * len(dims))
    for i, (fan_in, fan_out) in enumerate(dims):
        bound = 1.0 / math.sqrt(fan_in)
        params[f"w{i}"] = jax.random.uniform(
            keys[2 * i], (fan_in, fan_out), jnp.float32, -bound, bound)
        params[f"b{i}"] = jax.random.uniform(
            keys[2 * i + 1], (fan_out,), jnp.float32, -bound, bound)
    return params


def pack_params(params, state_dim, action_cnt):
    """Pad every layer to 128 lanes and pack into 2 operands: bf16 weights, f32 biases."""
    assert state_dim <= LANE and action_cnt <= LANE, "dims must fit one 128-lane tile"

    def pad_w(w):
        return jnp.zeros((LANE, LANE), jnp.float32).at[:w.shape[0], :w.shape[1]].set(w)

    def pad_b(b, fill):
        return jnp.full((LANE,), fill, jnp.float32).at[:b.shape[0]].set(b)

    w_packed = jnp.stack(
        [pad_w(params["w0"]), pad_w(params["w1"]), pad_w(params["w2"])]
    ).astype(jnp.bfloat16)
    b_packed = jnp.stack(
        [pad_b(params["b0"], 0.0),
         pad_b(params["b1"], 0.0),
         pad_b(params["b2"], -1e30)]  # kill padded action lanes in the softmax
    )
    return {"w": w_packed, "b": b_packed}


@functools.partial(jax.jit, static_argnames=("action_cnt", "block_rows"))
def policy_net_forward(x, w_packed, b_packed, *, action_cnt, block_rows=2048):
    """x: (B, state_dim) f32 -> (B, action_cnt) f32 softmax probabilities.

    Note: activations/matmuls run in bf16 (f32 accumulation) and probabilities
    round through bf16 on HBM writeback, so results match the f32 torch
    reference to ~5e-2 — acceptable for an RL policy.
    """
    B, state_dim = x.shape
    assert state_dim <= LANE and action_cnt <= LANE

    # Grid / tile sizing: bounded padding (cdiv-based), >=2 even steps for
    # mid/large batches so both v7x TensorCores get work.
    n_steps = _cdiv(B, block_rows)
    if B >= 16:
        n_steps = max(n_steps, 2)
    if n_steps > 1 and n_steps % 2:
        n_steps += 1
    tb = _round_up(_cdiv(B, n_steps), 8)       # rows per grid step (8-aligned)
    b_pad = _round_up(B, tb)
    n_steps = b_pad // tb

    x_in = x if b_pad == B else jnp.pad(x, ((0, b_pad - B), (0, 0)))

    # Deeper input buffering only when the grid is deep enough to benefit.
    x_spec_kwargs = {}
    if n_steps >= 3:
        x_spec_kwargs["pipeline_mode"] = pl.Buffered(3)

    flops = 2 * b_pad * (state_dim * LANE + 2 * LANE * LANE)
    bytes_accessed = (b_pad * state_dim * 4        # x (f32, no lane padding)
                      + w_packed.size * 2          # bf16 weights
                      + b_packed.size * 4          # f32 biases
                      + b_pad * LANE * 2)          # bf16 output

    probs_pad = pl.pallas_call(
        functools.partial(policy_net_kernel, state_dim),
        out_shape=jax.ShapeDtypeStruct((b_pad, LANE), jnp.bfloat16),
        grid=(n_steps,),
        in_specs=[
            # x: tiled over batch, raw feature width (== full array dim)
            pl.BlockSpec((tb, state_dim), lambda i: (i, 0), **x_spec_kwargs),
            pl.BlockSpec((3, LANE, LANE), lambda i: (0, 0, 0)),  # weights resident
            pl.BlockSpec((3, LANE), lambda i: (0, 0)),           # biases  resident
        ],
        out_specs=pl.BlockSpec((tb, LANE), lambda i: (i, 0)),    # lane-dense bf16 out
        compiler_params=pltpu.CompilerParams(
            dimension_semantics=("parallel",)),                  # v7x: 2 TCs share batch
        cost_estimate=pl.CostEstimate(
            flops=flops,
            transcendentals=b_pad * LANE,        # exp
            bytes_accessed=bytes_accessed),
    )(x_in, w_packed, b_packed)

    return probs_pad[:B, :action_cnt].astype(jnp.float32)


if __name__ == "__main__":
    state_dim = 16
    action_cnt = 8

    key = jax.random.PRNGKey(0)
    k_x1, k_x2, k_p = jax.random.split(key, 3)
    params = init_params(k_p, state_dim, action_cnt)
    packed = pack_params(params, state_dim, action_cnt)

    # reference replicating the kernel's bf16 matmul path in plain JAX
    def ref_bf16(x, w, b):
        h = x.astype(jnp.bfloat16)
        h = jnp.maximum(
            jnp.dot(h, w[0, :state_dim, :],
                    preferred_element_type=jnp.float32) + b[0], 0.0)
        h = jnp.maximum(
            jnp.dot(h.astype(jnp.bfloat16), w[1],
                    preferred_element_type=jnp.float32) + b[1], 0.0)
        logits = jnp.dot(h.astype(jnp.bfloat16), w[2],
                         preferred_element_type=jnp.float32) + b[2]
        return jax.nn.softmax(logits, axis=1)[:, :action_cnt]

    # full-precision reference of the original torch module semantics
    def ref_f32(x, p):
        h = jnp.maximum(x @ p["w0"] + p["b0"], 0.0)
        h = jnp.maximum(h @ p["w1"] + p["b1"], 0.0)
        return jax.nn.softmax(h @ p["w2"] + p["b2"], axis=1)

    # small batch (single grid step) and larger batch (multi-step pipeline,
    # row padding, Buffered input, parallel grid)
    for k_x, batch in ((k_x1, 8), (k_x2, 5000)):
        x = jax.random.normal(k_x, (batch, state_dim), jnp.float32)
        probs = jax.block_until_ready(
            policy_net_forward(x, packed["w"], packed["b"],
                               action_cnt=action_cnt))

        assert probs.shape == (batch, action_cnt)
        # rows sum to ~1 (exact divide; only bf16 output rounding remains)
        assert bool(jnp.allclose(jnp.sum(probs, axis=1), 1.0, atol=2e-2))
        # matches the bf16 compute path
        assert bool(jnp.allclose(probs, ref_bf16(x, packed["w"], packed["b"]),
                                 atol=2e-2))

    # f32 torch-semantics reference (bf16 tolerance) on the small batch
    x_small = jax.random.normal(k_x1, (8, state_dim), jnp.float32)
    probs_small = policy_net_forward(x_small, packed["w"], packed["b"],
                                     action_cnt=action_cnt)
    assert bool(jnp.allclose(probs_small, ref_f32(x_small, params), atol=5e-2))

    print("KERNEL_OK")
</pallas_src>

<mosaic_0001>
module attributes {stable_mosaic.version = 11 : i64} {
  func.func @policy_net_kernel(%arg0: i32, %arg1: memref<8x16xf32, #tpu.memory_space<vmem>>, %arg2: memref<3x128x128xbf16, #tpu.memory_space<vmem>>, %arg3: memref<3x128xf32, #tpu.memory_space<vmem>>, %arg4: memref<8x128xbf16, #tpu.memory_space<vmem>>) attributes {dimension_semantics = [#tpu.dimension_semantics<parallel>], iteration_bounds = array<i64: 1>, scalar_prefetch = 0 : i64, scratch_operands = 0 : i64, tpu.core_type = #tpu.core_type<tc>, window_params = [{transform_indices = @transform_0, window_bounds = array<i64: 8, 16>}, {pipeline_mode = #tpu.pipeline_mode<synchronous>, transform_indices = @transform_1, window_bounds = array<i64: 3, 128, 128>}, {pipeline_mode = #tpu.pipeline_mode<synchronous>, transform_indices = @transform_2, window_bounds = array<i64: 3, 128>}, {transform_indices = @transform_3, window_bounds = array<i64: 8, 128>}]} {
    %c0 = arith.constant 0 : index
    %c0_0 = arith.constant 0 : index
    %0 = vector.load %arg1[%c0, %c0_0] : memref<8x16xf32, #tpu.memory_space<vmem>>, vector<8x16xf32>
    %1 = arith.truncf %0 : vector<8x16xf32> to vector<8x16xbf16>
    %c0_1 = arith.constant 0 : index
    %c0_2 = arith.constant 0 : index
    %c0_3 = arith.constant 0 : index
    %2 = vector.load %arg2[%c0_1, %c0_2, %c0_3] : memref<3x128x128xbf16, #tpu.memory_space<vmem>>, vector<1x128x128xbf16>
    %3 = vector.shape_cast %2 : vector<1x128x128xbf16> to vector<128x128xbf16>
    %4 = vector.extract_strided_slice %3 {offsets = [0, 0], sizes = [16, 128], strides = [1, 1]} : vector<128x128xbf16> to vector<16x128xbf16>
    %cst = arith.constant dense<0.000000e+00> : vector<8x128xf32>
    %5 = tpu.matmul %1, %4, %cst {dimension_numbers = #tpu.dot_dimension_numbers<[1], [0], [0], [1], [0, 0, 1, 1], [], []>} : vector<8x16xbf16>, vector<16x128xbf16>, vector<8x128xf32> -> vector<8x128xf32>
    %c0_4 = arith.constant 0 : index
    %c0_5 = arith.constant 0 : index
    %6 = vector.load %arg3[%c0_4, %c0_5] : memref<3x128xf32, #tpu.memory_space<vmem>>, vector<1x128xf32>
    %7 = vector.broadcast %6 : vector<1x128xf32> to vector<8x128xf32>
    %8 = arith.addf %5, %7 : vector<8x128xf32>
    %cst_6 = arith.constant 0.000000e+00 : f32
    %9 = vector.broadcast %cst_6 : f32 to vector<8x128xf32>
    %10 = arith.maximumf %8, %9 : vector<8x128xf32>
    %11 = arith.truncf %10 : vector<8x128xf32> to vector<8x128xbf16>
    %c1 = arith.constant 1 : index
    %c0_7 = arith.constant 0 : index
    %c0_8 = arith.constant 0 : index
    %12 = vector.load %arg2[%c1, %c0_7, %c0_8] : memref<3x128x128xbf16, #tpu.memory_space<vmem>>, vector<1x128x128xbf16>
    %13 = vector.shape_cast %12 : vector<1x128x128xbf16> to vector<128x128xbf16>
    %cst_9 = arith.constant dense<0.000000e+00> : vector<8x128xf32>
    %14 = tpu.matmul %11, %13, %cst_9 {dimension_numbers = #tpu.dot_dimension_numbers<[1], [0], [0], [1], [0, 0, 1, 1], [], []>} : vector<8x128xbf16>, vector<128x128xbf16>, vector<8x128xf32> -> vector<8x128xf32>
    %c1_10 = arith.constant 1 : index
    %c0_11 = arith.constant 0 : index
    %15 = vector.load %arg3[%c1_10, %c0_11] : memref<3x128xf32, #tpu.memory_space<vmem>>, vector<1x128xf32>
    %16 = vector.broadcast %15 : vector<1x128xf32> to vector<8x128xf32>
    %17 = arith.addf %14, %16 : vector<8x128xf32>
    %cst_12 = arith.constant 0.000000e+00 : f32
    %18 = vector.broadcast %cst_12 : f32 to vector<8x128xf32>
    %19 = arith.maximumf %17, %18 : vector<8x128xf32>
    %20 = arith.truncf %19 : vector<8x128xf32> to vector<8x128xbf16>
    %c2 = arith.constant 2 : index
    %c0_13 = arith.constant 0 : index
    %c0_14 = arith.constant 0 : index
    %21 = vector.load %arg2[%c2, %c0_13, %c0_14] : memref<3x128x128xbf16, #tpu.memory_space<vmem>>, vector<1x128x128xbf16>
    %22 = vector.shape_cast %21 : vector<1x128x128xbf16> to vector<128x128xbf16>
    %cst_15 = arith.constant dense<0.000000e+00> : vector<8x128xf32>
    %23 = tpu.matmul %20, %22, %cst_15 {dimension_numbers = #tpu.dot_dimension_numbers<[1], [0], [0], [1], [0, 0, 1, 1], [], []>} : vector<8x128xbf16>, vector<128x128xbf16>, vector<8x128xf32> -> vector<8x128xf32>
    %c2_16 = arith.constant 2 : index
    %c0_17 = arith.constant 0 : index
    %24 = vector.load %arg3[%c2_16, %c0_17] : memref<3x128xf32, #tpu.memory_space<vmem>>, vector<1x128xf32>
    %25 = vector.broadcast %24 : vector<1x128xf32> to vector<8x128xf32>
    %26 = arith.addf %23, %25 : vector<8x128xf32>
    %cst_18 = arith.constant dense<0xFF800000> : vector<8xf32>
    %27 = vector.multi_reduction <maximumf>, %26, %cst_18 [1] : vector<8x128xf32> to vector<8xf32>
    %28 = vector.shape_cast %27 : vector<8xf32> to vector<8x1xf32>
    %29 = vector.broadcast %28 : vector<8x1xf32> to vector<8x128xf32>
    %30 = arith.subf %26, %29 : vector<8x128xf32>
    %31 = math.exp %30 : vector<8x128xf32>
    %cst_19 = arith.constant dense<0.000000e+00> : vector<8xf32>
    %32 = vector.multi_reduction <add>, %31, %cst_19 [1] : vector<8x128xf32> to vector<8xf32>
    %33 = vector.shape_cast %32 : vector<8xf32> to vector<8x1xf32>
    %34 = vector.broadcast %33 : vector<8x1xf32> to vector<8x128xf32>
    %35 = arith.divf %31, %34 : vector<8x128xf32>
    %36 = arith.truncf %35 : vector<8x128xf32> to vector<8x128xbf16>
    %c0_20 = arith.constant 0 : index
    %c0_21 = arith.constant 0 : index
    %37 = vector.load %arg4[%c0_20, %c0_21] : memref<8x128xbf16, #tpu.memory_space<vmem>>, vector<8x128xbf16>
    tpu.vector_store %arg4[%c0_20, %c0_21], %36 {strides = array<i32>} : memref<8x128xbf16, #tpu.memory_space<vmem>>, vector<8x128xbf16>,
    return
  }
  func.func @transform_0(%arg0: i32) -> (i32, i32) {
    %c0_i32 = arith.constant 0 : i32
    %c0_i32_0 = arith.constant 0 : i32
    return %arg0, %c0_i32 : i32, i32
  }
  func.func @transform_1(%arg0: i32) -> (i32, i32, i32) {
    %c0_i32 = arith.constant 0 : i32
    %c0_i32_0 = arith.constant 0 : i32
    %c0_i32_1 = arith.constant 0 : i32
    %c0_i32_2 = arith.constant 0 : i32
    return %c0_i32, %c0_i32_0, %c0_i32_1 : i32, i32, i32
  }
  func.func @transform_2(%arg0: i32) -> (i32, i32) {
    %c0_i32 = arith.constant 0 : i32
    %c0_i32_0 = arith.constant 0 : i32
    %c0_i32_1 = arith.constant 0 : i32
    return %c0_i32, %c0_i32_0 : i32, i32
  }
  func.func @transform_3(%arg0: i32) -> (i32, i32) {
    %c0_i32 = arith.constant 0 : i32
    %c0_i32_0 = arith.constant 0 : i32
    return %arg0, %c0_i32 : i32, i32
  }
}

</mosaic_0001>

<bundles_post_ra>
// kernel: policy_net_forward.1
= control target key start
LH: loop header
LB: loop body
LE: loop exit
PB: predicated region body
PF: predicated region fallthrough
CT: control target
= control target key end

     0   :  { %8 = vsyncpa [#allocation3], 0  ;;  %s492_s0 = inlined_call_operand.hbm [shape: f32[8,16], index: 0, kind: input, shape index: {}]   ;;  %s493_s1 = inlined_call_operand.hbm [shape: bf16[3,128,128], index: 1, kind: input, shape index: {}]   ;;  %s494_s2 = inlined_call_operand.hbm [shape: f32[3,128], index: 2, kind: input, shape index: {}]   ;;  %s495_s3 = inlined_call_operand.vmem [shape: bf16[8,128], index: 3, kind: output, shape index: {}]  }
   0x1   :  { %9 = vsyncpa [#allocation5], 0  ;;  %s25_s14 = sshll.u32 %s493_s1, 4  ;;  %s455_s15 = smov [#allocation4]   ;;  %s26_s14 = int_to_ptr.hbm [resolvable:$true] %s25_s14 }
   0x2   :  { %s27_s16 = sshll.u32 %s455_s15, 4  ;;  %s15_s19 = sshll.u32 %s492_s0, 4  ;;  %s28_s16 = int_to_ptr.vmem [resolvable:$true] %s27_s16  ;;  %s16_s19 = int_to_ptr.hbm [resolvable:$true] %s15_s19 }
   0x3   :  { %s456_s20 = smov 64   ;;  %s457_s21 = smov 4  }
   0x4   :  { %33 = dma.hbm_to_vmem [thread:$0]  %s26_s14, 3072, %s28_s16, [#allocation5], %s456_s20, %s456_s20, %s457_s21  }
   0x5   :  { %s458_s22 = smov [#allocation2]   ;;  %s39_s26 = sshll.u32 %s494_s2, 4  ;;  %s40_s26 = int_to_ptr.hbm [resolvable:$true] %s39_s26 }
   0x6   :  { %s17_s23 = sshll.u32 %s458_s22, 4  ;;  %s459_s1 = smov [#allocation6]   ;;  %s18_s23 = int_to_ptr.vmem [resolvable:$true] %s17_s23 }
   0x7   :  { %20 = dma.hbm_to_vmem [thread:$0]  %s16_s19, 128, %s18_s23, [#allocation3]  }
   0x8   :  { %s41_s27 = sshll.u32 %s459_s1, 4  ;;  %s42_s27 = int_to_ptr.vmem [resolvable:$true] %s41_s27 }
   0x9   :  { %44 = dma.hbm_to_vmem [thread:$0]  %s40_s26, 64, %s42_s27, [#allocation5]  }
   0xa   :  { %451 = dma.done.wait [#allocation3], 128  }
   0xb   :  { %452 = vsyncadd [#allocation3], 4294967168 }
   0xc   :  { %453 = dma.done.wait [#allocation5], 3136  }
   0xd   :  { %454 = vsyncadd [#allocation5], 4294964160  ;;  %v350_v0 = vld [vmem:[#allocation4] sm:$0xff]  ;;  %v58_v1 = vld [vmem:[#allocation2] sm:$0xff]  ;;  %vm70_vm0 = vcmask 130048  }
   0xe   :  { %v358_v2 = vld [vmem:[#allocation4 + $0x78] sm:$0xff]  ;;  %v59_v3 = vpack.c.bf16 %v58_v1, %v58_v1  ;;  %81 = vmatpush.bf16.msra.mxu0 %v350_v0  ;;  %v357_v4 = vld [vmem:[#allocation4 + $0x70] sm:$0xff]  ;;  %v356_v5 = vld [vmem:[#allocation4 + $0x68] sm:$0xff] }
   0xf   :  { %156 = vmatpush.bf16.msra.mxu1 %v358_v2  ;;  %v355_v6 = vld [vmem:[#allocation4 + $0x60] sm:$0xff]  ;;  %v354_v7 = vld [vmem:[#allocation4 + $0x58] sm:$0xff]  ;;  %v353_v8 = vld [vmem:[#allocation4 + $0x50] sm:$0xff] }
  0x10   :  { %v352_v9 = vld [vmem:[#allocation4 + $0x48] sm:$0xff]  ;;  %v351_v10 = vld [vmem:[#allocation4 + $0x40] sm:$0xff]  ;;  %v366_v11 = vld [vmem:[#allocation4 + $0xb8] sm:$0xff] }
  0x11   :  { %285 = vmatmul.msk.bf16.vlgmr.msra.gmra.mxu0 %vm70_vm0, %v59_v3  ;;  %238 = vmatpush.bf16.msra.mxu2 %v366_v11  ;;  %v365_v12 = vld [vmem:[#allocation4 + $0xb0] sm:$0xff]  ;;  %v364_v13 = vld [vmem:[#allocation4 + $0xa8] sm:$0xff]  ;;  %v363_v14 = vld [vmem:[#allocation4 + $0xa0] sm:$0xff] }
  0x12   :  { %v362_v15 = vld [vmem:[#allocation4 + $0x98] sm:$0xff]  ;;  %v361_v16 = vld [vmem:[#allocation4 + $0x90] sm:$0xff]  ;;  %v372_v17 = vld [vmem:[#allocation6] ss:$0 sm:$0xff] }
  0x13   :  { %157 = vmatpush.bf16.msra.mxu1 %v357_v4  ;;  %v360_v23 = vld [vmem:[#allocation4 + $0x88] sm:$0xff]  ;;  %v359_v24 = vld [vmem:[#allocation4 + $0x80] sm:$0xff] }
  0x14   :  { %v373_v25 = vld [vmem:[#allocation6 + $0x1] ss:$0 sm:$0xff]  ;;  %v374_v31 = vld [vmem:[#allocation6 + $0x2] ss:$0 sm:$0xff] }
  0x15   :  { %239 = vmatpush.bf16.msra.mxu2 %v365_v12 }
  0x17   :  { %158 = vmatpush.bf16.msra.mxu1 %v356_v5 }
  0x19   :  { %240 = vmatpush.bf16.msra.mxu2 %v364_v13 }
  0x1b   :  { %159 = vmatpush.bf16.msra.mxu1 %v355_v6 }
  0x1d   :  { %241 = vmatpush.bf16.msra.mxu2 %v363_v14 }
  0x1f   :  { %160 = vmatpush.bf16.msra.mxu1 %v354_v7 }
  0x21   :  { %242 = vmatpush.bf16.msra.mxu2 %v362_v15 }
  0x23   :  { %161 = vmatpush.bf16.msra.mxu1 %v353_v8 }
  0x25   :  { %243 = vmatpush.bf16.msra.mxu2 %v361_v16 }
  0x27   :  { %162 = vmatpush.bf16.msra.mxu1 %v352_v9 }
  0x29   :  { %244 = vmatpush.bf16.msra.mxu2 %v360_v23 }
  0x2b   :  { %163 = vmatpush.bf16.msra.mxu1 %v351_v10 }
  0x2d   :  { %245 = vmatpush.bf16.msra.mxu2 %v359_v24 }
  0x8e   :  { %v83_v18 = vpop.f32.mrf.mxu0 }
  0x8f   :  { %v84_v19 = vadd.f32 %v372_v17, %v83_v18 }
  0x91   :  { %v87_v20 = vmax.f32 %v84_v19, 0.0 }
  0x93   :  { %v88_v21 = vpack.c.bf16 %v87_v20, %v87_v20 }
  0x95   :  { %164 = vmatmul.bf16.vlgmr.msra.gmra.mxu1 %v88_v21 }
  0x96   :  { %v85_v22 = vpop.f32.mrf.mxu0 }
 0x112   :  { %v165_v26 = vpop.f32.mrf.mxu1 }
 0x113   :  { %v166_v27 = vadd.f32 %v373_v25, %v165_v26 }
 0x115   :  { %v169_v28 = vmax.f32 %v166_v27, 0.0 }
 0x117   :  { %v170_v29 = vpack.c.bf16 %v169_v28, %v169_v28 }
 0x119   :  { %246 = vmatmul.bf16.vlgmr.msra.gmra.mxu2 %v170_v29 }
 0x11a   :  { %v167_v30 = vpop.f32.mrf.mxu1 }
 0x19c   :  { %v247_v32 = vpop.f32.mrf.mxu2 }
 0x19d   :  { %v248_v33 = vadd.f32 %v374_v31, %v247_v32 }
 0x19f   :  { %251 = vmax.xlane.f32.xlu0 %v248_v33 }
 0x1a4   :  { %v249_v34 = vpop.f32.mrf.mxu2 }
 0x212   :  { %v252_v35 = vpop.xlane.xlu0 %251 }
 0x213   :  { %v253_v36 = vsub.f32 %v248_v33, %v252_v35 }
 0x215   :  { %v254_v37 = vmul.f32 1.442695, %v253_v36 }
 0x217   :  { %375 = vpow2.f32 %v254_v37 }
 0x21d   :  { %v376_v38 = vpop.eup %375 }
 0x21e   :  { %256 = vadd.xlane.f32.xlu0 %v376_v38 }
 0x291   :  { %v257_v39 = vpop.xlane.xlu0 %256 }
 0x292   :  { %377 = vrcp.f32 %v257_v39  ;;  %v269_v43 = vand.u32 2147483648, %v257_v39  ;;  %v267_v45 = vand.u32 2147483647, %v257_v39  ;;  %vm263_vm2 = vweird.f32 %v257_v39 }
 0x294   :  { %v270_v47 = vor.u32 1.1754944e-38, %v269_v43  ;;  %vm268_vm4 = vcmp.eq.f32.partialorder %v267_v45, 8.507059e+37 }
 0x298   :  { %v378_v40 = vpop.eup %377 }
 0x299   :  { %v259_v41 = vmul.f32 %v378_v40, %v257_v39  ;;  %vm264_vm1 = vweird.f32 %v378_v40 }
 0x29a   :  { %vm265_vm3 = vmor %vm263_vm2, %vm264_vm1 }
 0x29b   :  { %v260_v42 = vsub.f32 1.0, %v259_v41 }
 0x29d   :  { %v261_v44 = vmul.f32 %v378_v40, %v260_v42 }
 0x29f   :  { %v262_v46 = vadd.f32 %v378_v40, %v261_v44 }
 0x2a1   :  { %v266_v48 = vsel %vm265_vm3, %v378_v40, %v262_v46 }
 0x2a2   :  { %v271_v49 = vsel %vm268_vm4, %v270_v47, %v266_v48 }
 0x2a3   :  { %v272_v50 = vmul.f32 %v376_v38, %v271_v49 }
 0x2a5   :  { %v273_v51 = vpack.c.bf16 %v272_v50, %v272_v50 }
 0x2a7   :  { %274 = vst [vmem:[%s495_s3] sm:$0xf] %v273_v51 }
 0x2a8   :  { %279 = vsyncpa [#allocation3], 1 }
 0x2a9   :  { %280 = vsyncpa [#allocation5], 1 }

</bundles_post_ra>
